<compile_context>
chip_gen: v6e
topology: v6e:2x2x1
jax: 0.10.0
libtpu: 0.0.40
codegen_flags: <defaults>
</compile_context>

<pallas_src>
import jax
import jax.numpy as jnp
from jax import lax
from jax.experimental import pallas as pl
from jax.experimental.pallas import tpu as pltpu

H_SIZE = 64
INPUT_SIZE = 1
SUBLANE = 8


def rnn_kernel(x_ref, h0_ref, w_ih_ref, w_hh_ref, b_ref, w_out_ref, b_out_ref,
               outs_ref, hT_ref, xp_scr):
    """One time-chunk of the fused RNN(tanh) recurrence + Linear(H, 1) head.

    x_ref    : (Tc*Bp, 1)  time-major scalar input for this chunk
    h0_ref   : (Bp, H)     initial hidden state (used only on chunk 0)
    w_ih_ref : (1, H)      W_ih^T (input_size == 1)
    w_hh_ref : (H, H)      W_hh^T (pre-transposed: recurrence is h @ W_hh^T)
    b_ref    : (1, H)      b_ih + b_hh
    w_out_ref: (1, H)      W_out (lane-dense row)
    b_out_ref: (1, 1)
    outs_ref : (Tc*Bp, 1)  per-step Linear(H,1) output for this chunk
    hT_ref   : (Bp, H)     hidden state; constant block index -> stays VMEM
                           resident across chunks and doubles as the carry
    xp_scr   : (Tc*Bp, H)  hoisted input projection, overwritten with h_t
    """
    Bp = h0_ref.shape[0]
    Tc = x_ref.shape[0] // Bp

    # Seed the carry from h0 on the first chunk only.
    @pl.when(pl.program_id(0) == 0)
    def _():
        hT_ref[...] = h0_ref[...]

    # (1) Hoisted input projection for the whole chunk at once (pure VPU
    #     broadcast: input_size == 1 makes x @ W_ih^T an outer product).
    #     NOTE: padded batch rows get value `b` here (not 0); they stay
    #     bounded under tanh and are sliced off in the wrapper.
    xp_scr[...] = x_ref[...] * w_ih_ref[...] + b_ref[...]

    w_hh_t = w_hh_ref[...]  # loaded once per chunk, reused every step

    # (2) Serial recurrence. Hidden state lives in the loop carry (registers);
    #     each step is one (Bp,H)@(H,H) MXU matmul + tanh. The consumed xp
    #     row-block is reused to stash h_t (single scratch buffer).
    def step(t, h):
        row = pl.multiple_of(t * Bp, SUBLANE)
        pre = xp_scr[pl.ds(row, Bp), :] + jnp.dot(
            h, w_hh_t, preferred_element_type=jnp.float32)
        h_new = jnp.tanh(pre)
        xp_scr[pl.ds(row, Bp), :] = h_new
        return h_new

    unroll = Tc if Tc <= 8 else 8  # full unroll only for short static chunks
    h_final = lax.fori_loop(0, Tc, step, hT_ref[...], unroll=unroll)
    hT_ref[...] = h_final

    # (3) Deferred head: Linear(H, 1) as VPU multiply + XLU lane reduction
    #     over all Tc*Bp hidden rows (avoids an N=1 MXU matmul).
    outs_ref[...] = (
        jnp.sum(xp_scr[...] * w_out_ref[...], axis=-1, keepdims=True)
        + b_out_ref[...])


def init_params(key):
    """Deterministic init matching PyTorch shapes (uniform +-1/sqrt(H))."""
    k = 1.0 / jnp.sqrt(jnp.float32(H_SIZE))
    ks = jax.random.split(key, 6)
    w_ih = jax.random.uniform(ks[0], (H_SIZE, INPUT_SIZE), jnp.float32, -k, k)
    w_hh = jax.random.uniform(ks[1], (H_SIZE, H_SIZE), jnp.float32, -k, k)
    b_ih = jax.random.uniform(ks[2], (H_SIZE,), jnp.float32, -k, k)
    b_hh = jax.random.uniform(ks[3], (H_SIZE,), jnp.float32, -k, k)
    w_out = jax.random.uniform(ks[4], (1, H_SIZE), jnp.float32, -k, k)
    b_out = jax.random.uniform(ks[5], (1,), jnp.float32, -k, k)
    return dict(w_ih=w_ih, w_hh=w_hh, b_ih=b_ih, b_hh=b_hh,
                w_out=w_out, b_out=b_out)


def _pick_chunk(T, max_chunk=32):
    """Largest divisor of T not exceeding max_chunk (keeps chunks exact)."""
    for c in range(min(T, max_chunk), 0, -1):
        if T % c == 0:
            return c
    return T


def rnn_forward(params, x, h_state=None, t_chunk=None):
    """Equivalent of RNN.forward(x, h_state).

    x       : (B, T, 1)  f32
    h_state : (1, B, H)  f32 or None
    returns : outs (B*T, 1), h_state (1, B, H)
    """
    B, T, _ = x.shape
    if h_state is None:
        h_state = jnp.zeros((1, B, H_SIZE), jnp.float32)

    # Pad batch to a sublane multiple so every vector op is fully occupied.
    Bp = ((B + SUBLANE - 1) // SUBLANE) * SUBLANE

    Tc = _pick_chunk(T) if t_chunk is None else t_chunk
    assert T % Tc == 0, "time-chunk must divide T"
    n_chunks = T // Tc
    rows = Tc * Bp

    x_tm = jnp.transpose(x[..., 0])                           # (T, B)
    x_tm = jnp.pad(x_tm, ((0, 0), (0, Bp - B)))               # (T, Bp)
    x_col = x_tm.reshape(T * Bp, 1)                           # (T*Bp, 1)

    h0 = jnp.pad(h_state[0].astype(jnp.float32),
                 ((0, Bp - B), (0, 0)))                       # (Bp, H)

    w_ih_row = params["w_ih"].reshape(1, H_SIZE)              # (1, H) == W_ih^T
    w_hh_t = jnp.transpose(params["w_hh"])                    # (H, H) == W_hh^T
    b = (params["b_ih"] + params["b_hh"]).reshape(1, H_SIZE)  # fused bias
    w_out_row = params["w_out"].reshape(1, H_SIZE)            # (1, H), lane-dense
    b_out = params["b_out"].reshape(1, 1)

    outs_col, hT = pl.pallas_call(
        rnn_kernel,
        out_shape=(jax.ShapeDtypeStruct((T * Bp, 1), jnp.float32),
                   jax.ShapeDtypeStruct((Bp, H_SIZE), jnp.float32)),
        grid_spec=pltpu.PrefetchScalarGridSpec(
            num_scalar_prefetch=0,
            grid=(n_chunks,),
            in_specs=[
                pl.BlockSpec((rows, 1), lambda c: (c, 0)),            # x chunk
                pl.BlockSpec((Bp, H_SIZE), lambda c: (0, 0)),         # h0
                pl.BlockSpec((1, H_SIZE), lambda c: (0, 0)),          # W_ih^T
                pl.BlockSpec((H_SIZE, H_SIZE), lambda c: (0, 0)),     # W_hh^T
                pl.BlockSpec((1, H_SIZE), lambda c: (0, 0)),          # bias
                pl.BlockSpec((1, H_SIZE), lambda c: (0, 0)),          # W_out
                pl.BlockSpec((1, 1), lambda c: (0, 0)),               # b_out
            ],
            out_specs=[
                pl.BlockSpec((rows, 1), lambda c: (c, 0)),            # outs chunk
                pl.BlockSpec((Bp, H_SIZE), lambda c: (0, 0)),         # hT (resident)
            ],
            scratch_shapes=[pltpu.VMEM((rows, H_SIZE), jnp.float32)],
        ),
        compiler_params=pltpu.CompilerParams(
            dimension_semantics=("arbitrary",),
            vmem_limit_bytes=32 * 1024 * 1024,
        ),
    )(x_col, h0, w_ih_row, w_hh_t, b, w_out_row, b_out)

    # Kernel rows are ordered (t, b); PyTorch's r_out.view(-1, H) is (b, t).
    outs = jnp.transpose(outs_col.reshape(T, Bp)[:, :B]).reshape(B * T, 1)
    h_state_out = hT[:B][None]                                # (1, B, H)
    return outs, h_state_out


def rnn_forward_ref(params, x, h_state):
    """Pure-JAX reference (matches torch.nn.RNN tanh semantics)."""
    B, T, _ = x.shape
    h = h_state[0]                                            # (B, H)

    def step(h, x_t):
        h_new = jnp.tanh(x_t @ params["w_ih"].T + params["b_ih"]
                         + h @ params["w_hh"].T + params["b_hh"])
        return h_new, h_new

    hT, r_out = lax.scan(step, h, jnp.swapaxes(x, 0, 1))      # r_out: (T, B, H)
    r_out = jnp.swapaxes(r_out, 0, 1).reshape(-1, H_SIZE)     # (B*T, H)
    outs = r_out @ params["w_out"].T + params["b_out"]
    return outs, hT[None]


if __name__ == "__main__":
    key = jax.random.PRNGKey(0)
    pkey, xkey, hkey, xkey2 = jax.random.split(key, 4)

    params = init_params(pkey)

    # Primary small-shape check: B=2, T=8 (single chunk).
    B, T = 2, 8
    x = jax.random.normal(xkey, (B, T, INPUT_SIZE), jnp.float32)
    h0 = jax.random.normal(hkey, (1, B, H_SIZE), jnp.float32)

    outs, h_state = jax.block_until_ready(rnn_forward(params, x, h0))
    outs_ref, h_ref = rnn_forward_ref(params, x, h0)
    assert outs.shape == (B * T, 1) and h_state.shape == (1, B, H_SIZE)
    assert jnp.allclose(outs, outs_ref, atol=1e-5, rtol=1e-5)
    assert jnp.allclose(h_state, h_ref, atol=1e-5, rtol=1e-5)

    # Multi-chunk check: T=24 streamed as 3 chunks of 8 (carry across grid).
    T2 = 24
    x2 = jax.random.normal(xkey2, (B, T2, INPUT_SIZE), jnp.float32)
    outs2, h_state2 = jax.block_until_ready(
        rnn_forward(params, x2, h0, t_chunk=8))
    outs2_ref, h2_ref = rnn_forward_ref(params, x2, h0)
    assert jnp.allclose(outs2, outs2_ref, atol=1e-5, rtol=1e-5)
    assert jnp.allclose(h_state2, h2_ref, atol=1e-5, rtol=1e-5)

    print("KERNEL_OK")
</pallas_src>

<mosaic_0001>
module attributes {stable_mosaic.version = 11 : i64} {
  func.func @rnn_kernel(%arg0: i32, %arg1: memref<64x1xf32, #tpu.memory_space<vmem>>, %arg2: memref<8x64xf32, #tpu.memory_space<vmem>>, %arg3: memref<1x64xf32, #tpu.memory_space<vmem>>, %arg4: memref<64x64xf32, #tpu.memory_space<vmem>>, %arg5: memref<1x64xf32, #tpu.memory_space<vmem>>, %arg6: memref<1x64xf32, #tpu.memory_space<vmem>>, %arg7: memref<1x1xf32, #tpu.memory_space<vmem>>, %arg8: memref<64x1xf32, #tpu.memory_space<vmem>>, %arg9: memref<8x64xf32, #tpu.memory_space<vmem>>, %arg10: memref<64x64xf32, #tpu.memory_space<vmem>>) attributes {dimension_semantics = [#tpu.dimension_semantics<arbitrary>], iteration_bounds = array<i64: 1>, scalar_prefetch = 0 : i64, scratch_operands = 1 : i64, tpu.core_type = #tpu.core_type<tc>, window_params = [{transform_indices = @transform_0, window_bounds = array<i64: 64, 1>}, {pipeline_mode = #tpu.pipeline_mode<synchronous>, transform_indices = @transform_1, window_bounds = array<i64: 8, 64>}, {pipeline_mode = #tpu.pipeline_mode<synchronous>, transform_indices = @transform_2, window_bounds = array<i64: 1, 64>}, {pipeline_mode = #tpu.pipeline_mode<synchronous>, transform_indices = @transform_3, window_bounds = array<i64: 64, 64>}, {pipeline_mode = #tpu.pipeline_mode<synchronous>, transform_indices = @transform_4, window_bounds = array<i64: 1, 64>}, {pipeline_mode = #tpu.pipeline_mode<synchronous>, transform_indices = @transform_5, window_bounds = array<i64: 1, 64>}, {pipeline_mode = #tpu.pipeline_mode<synchronous>, transform_indices = @transform_6, window_bounds = array<i64: 1, 1>}, {transform_indices = @transform_7, window_bounds = array<i64: 64, 1>}, {pipeline_mode = #tpu.pipeline_mode<synchronous>, transform_indices = @transform_8, window_bounds = array<i64: 8, 64>}]} {
    %c0_i32 = arith.constant 0 : i32
    %0 = arith.cmpi eq, %arg0, %c0_i32 : i32
    %1 = arith.extui %0 : i1 to i32
    %c0_i32_0 = arith.constant 0 : i32
    %2 = arith.cmpi ne, %1, %c0_i32_0 : i32
    scf.if %2 {
      %c0_55 = arith.constant 0 : index
      %c0_56 = arith.constant 0 : index
      %97 = vector.load %arg2[%c0_55, %c0_56] : memref<8x64xf32, #tpu.memory_space<vmem>>, vector<8x64xf32>
      %c0_57 = arith.constant 0 : index
      %c0_58 = arith.constant 0 : index
      %98 = vector.load %arg9[%c0_57, %c0_58] : memref<8x64xf32, #tpu.memory_space<vmem>>, vector<8x64xf32>
      tpu.vector_store %arg9[%c0_57, %c0_58], %97 {strides = array<i32>} : memref<8x64xf32, #tpu.memory_space<vmem>>, vector<8x64xf32>,
    } else {
    }
    %c0 = arith.constant 0 : index
    %c0_1 = arith.constant 0 : index
    %3 = vector.load %arg1[%c0, %c0_1] : memref<64x1xf32, #tpu.memory_space<vmem>>, vector<64x1xf32>
    %c0_2 = arith.constant 0 : index
    %c0_3 = arith.constant 0 : index
    %4 = vector.load %arg3[%c0_2, %c0_3] : memref<1x64xf32, #tpu.memory_space<vmem>>, vector<1x64xf32>
    %5 = vector.broadcast %3 : vector<64x1xf32> to vector<64x64xf32>
    %6 = vector.broadcast %4 : vector<1x64xf32> to vector<64x64xf32>
    %7 = arith.mulf %5, %6 : vector<64x64xf32>
    %c0_4 = arith.constant 0 : index
    %c0_5 = arith.constant 0 : index
    %8 = vector.load %arg5[%c0_4, %c0_5] : memref<1x64xf32, #tpu.memory_space<vmem>>, vector<1x64xf32>
    %9 = vector.broadcast %8 : vector<1x64xf32> to vector<64x64xf32>
    %10 = arith.addf %7, %9 : vector<64x64xf32>
    %c0_6 = arith.constant 0 : index
    %c0_7 = arith.constant 0 : index
    %11 = vector.load %arg10[%c0_6, %c0_7] : memref<64x64xf32, #tpu.memory_space<vmem>>, vector<64x64xf32>
    tpu.vector_store %arg10[%c0_6, %c0_7], %10 {strides = array<i32>} : memref<64x64xf32, #tpu.memory_space<vmem>>, vector<64x64xf32>,
    %c0_8 = arith.constant 0 : index
    %c0_9 = arith.constant 0 : index
    %12 = vector.load %arg4[%c0_8, %c0_9] : memref<64x64xf32, #tpu.memory_space<vmem>>, vector<64x64xf32>
    %c0_10 = arith.constant 0 : index
    %c0_11 = arith.constant 0 : index
    %13 = vector.load %arg9[%c0_10, %c0_11] : memref<8x64xf32, #tpu.memory_space<vmem>>, vector<8x64xf32>
    %c0_i32_12 = arith.constant 0 : i32
    %c8_i32 = arith.constant 8 : i32
    %14 = arith.muli %c0_i32_12, %c8_i32 : i32
    %15 = tpu.assume_multiple %14, 8 : i32
    %16 = arith.index_cast %15 : i32 to index
    %c0_13 = arith.constant 0 : index
    %17 = vector.load %arg10[%16, %c0_13] : memref<64x64xf32, #tpu.memory_space<vmem>>, vector<8x64xf32>
    %cst = arith.constant dense<0.000000e+00> : vector<8x64xf32>
    %18 = tpu.matmul %13, %12, %cst {dimension_numbers = #tpu.dot_dimension_numbers<[1], [0], [0], [1], [0, 0, 1, 1], [], []>} : vector<8x64xf32>, vector<64x64xf32>, vector<8x64xf32> -> vector<8x64xf32>
    %19 = arith.addf %17, %18 : vector<8x64xf32>
    %20 = math.tanh %19 : vector<8x64xf32>
    %21 = arith.index_cast %15 : i32 to index
    %c0_14 = arith.constant 0 : index
    %22 = vector.load %arg10[%21, %c0_14] : memref<64x64xf32, #tpu.memory_space<vmem>>, vector<8x64xf32>
    tpu.vector_store %arg10[%21, %c0_14], %20 {strides = array<i32>} : memref<64x64xf32, #tpu.memory_space<vmem>>, vector<8x64xf32>,
    %c1_i32 = arith.constant 1 : i32
    %c8_i32_15 = arith.constant 8 : i32
    %23 = arith.muli %c1_i32, %c8_i32_15 : i32
    %24 = tpu.assume_multiple %23, 8 : i32
    %25 = arith.index_cast %24 : i32 to index
    %c0_16 = arith.constant 0 : index
    %26 = vector.load %arg10[%25, %c0_16] : memref<64x64xf32, #tpu.memory_space<vmem>>, vector<8x64xf32>
    %cst_17 = arith.constant dense<0.000000e+00> : vector<8x64xf32>
    %27 = tpu.matmul %20, %12, %cst_17 {dimension_numbers = #tpu.dot_dimension_numbers<[1], [0], [0], [1], [0, 0, 1, 1], [], []>} : vector<8x64xf32>, vector<64x64xf32>, vector<8x64xf32> -> vector<8x64xf32>
    %28 = arith.addf %26, %27 : vector<8x64xf32>
    %29 = math.tanh %28 : vector<8x64xf32>
    %30 = arith.index_cast %24 : i32 to index
    %c0_18 = arith.constant 0 : index
    %31 = vector.load %arg10[%30, %c0_18] : memref<64x64xf32, #tpu.memory_space<vmem>>, vector<8x64xf32>
    tpu.vector_store %arg10[%30, %c0_18], %29 {strides = array<i32>} : memref<64x64xf32, #tpu.memory_space<vmem>>, vector<8x64xf32>,
    %c2_i32 = arith.constant 2 : i32
    %c8_i32_19 = arith.constant 8 : i32
    %32 = arith.muli %c2_i32, %c8_i32_19 : i32
    %33 = tpu.assume_multiple %32, 8 : i32
    %34 = arith.index_cast %33 : i32 to index
    %c0_20 = arith.constant 0 : index
    %35 = vector.load %arg10[%34, %c0_20] : memref<64x64xf32, #tpu.memory_space<vmem>>, vector<8x64xf32>
    %cst_21 = arith.constant dense<0.000000e+00> : vector<8x64xf32>
    %36 = tpu.matmul %29, %12, %cst_21 {dimension_numbers = #tpu.dot_dimension_numbers<[1], [0], [0], [1], [0, 0, 1, 1], [], []>} : vector<8x64xf32>, vector<64x64xf32>, vector<8x64xf32> -> vector<8x64xf32>
    %37 = arith.addf %35, %36 : vector<8x64xf32>
    %38 = math.tanh %37 : vector<8x64xf32>
    %39 = arith.index_cast %33 : i32 to index
    %c0_22 = arith.constant 0 : index
    %40 = vector.load %arg10[%39, %c0_22] : memref<64x64xf32, #tpu.memory_space<vmem>>, vector<8x64xf32>
    tpu.vector_store %arg10[%39, %c0_22], %38 {strides = array<i32>} : memref<64x64xf32, #tpu.memory_space<vmem>>, vector<8x64xf32>,
    %c3_i32 = arith.constant 3 : i32
    %c8_i32_23 = arith.constant 8 : i32
    %41 = arith.muli %c3_i32, %c8_i32_23 : i32
    %42 = tpu.assume_multiple %41, 8 : i32
    %43 = arith.index_cast %42 : i32 to index
    %c0_24 = arith.constant 0 : index
    %44 = vector.load %arg10[%43, %c0_24] : memref<64x64xf32, #tpu.memory_space<vmem>>, vector<8x64xf32>
    %cst_25 = arith.constant dense<0.000000e+00> : vector<8x64xf32>
    %45 = tpu.matmul %38, %12, %cst_25 {dimension_numbers = #tpu.dot_dimension_numbers<[1], [0], [0], [1], [0, 0, 1, 1], [], []>} : vector<8x64xf32>, vector<64x64xf32>, vector<8x64xf32> -> vector<8x64xf32>
    %46 = arith.addf %44, %45 : vector<8x64xf32>
    %47 = math.tanh %46 : vector<8x64xf32>
    %48 = arith.index_cast %42 : i32 to index
    %c0_26 = arith.constant 0 : index
    %49 = vector.load %arg10[%48, %c0_26] : memref<64x64xf32, #tpu.memory_space<vmem>>, vector<8x64xf32>
    tpu.vector_store %arg10[%48, %c0_26], %47 {strides = array<i32>} : memref<64x64xf32, #tpu.memory_space<vmem>>, vector<8x64xf32>,
    %c4_i32 = arith.constant 4 : i32
    %c8_i32_27 = arith.constant 8 : i32
    %50 = arith.muli %c4_i32, %c8_i32_27 : i32
    %51 = tpu.assume_multiple %50, 8 : i32
    %52 = arith.index_cast %51 : i32 to index
    %c0_28 = arith.constant 0 : index
    %53 = vector.load %arg10[%52, %c0_28] : memref<64x64xf32, #tpu.memory_space<vmem>>, vector<8x64xf32>
    %cst_29 = arith.constant dense<0.000000e+00> : vector<8x64xf32>
    %54 = tpu.matmul %47, %12, %cst_29 {dimension_numbers = #tpu.dot_dimension_numbers<[1], [0], [0], [1], [0, 0, 1, 1], [], []>} : vector<8x64xf32>, vector<64x64xf32>, vector<8x64xf32> -> vector<8x64xf32>
    %55 = arith.addf %53, %54 : vector<8x64xf32>
    %56 = math.tanh %55 : vector<8x64xf32>
    %57 = arith.index_cast %51 : i32 to index
    %c0_30 = arith.constant 0 : index
    %58 = vector.load %arg10[%57, %c0_30] : memref<64x64xf32, #tpu.memory_space<vmem>>, vector<8x64xf32>
    tpu.vector_store %arg10[%57, %c0_30], %56 {strides = array<i32>} : memref<64x64xf32, #tpu.memory_space<vmem>>, vector<8x64xf32>,
    %c5_i32 = arith.constant 5 : i32
    %c8_i32_31 = arith.constant 8 : i32
    %59 = arith.muli %c5_i32, %c8_i32_31 : i32
    %60 = tpu.assume_multiple %59, 8 : i32
    %61 = arith.index_cast %60 : i32 to index
    %c0_32 = arith.constant 0 : index
    %62 = vector.load %arg10[%61, %c0_32] : memref<64x64xf32, #tpu.memory_space<vmem>>, vector<8x64xf32>
    %cst_33 = arith.constant dense<0.000000e+00> : vector<8x64xf32>
    %63 = tpu.matmul %56, %12, %cst_33 {dimension_numbers = #tpu.dot_dimension_numbers<[1], [0], [0], [1], [0, 0, 1, 1], [], []>} : vector<8x64xf32>, vector<64x64xf32>, vector<8x64xf32> -> vector<8x64xf32>
    %64 = arith.addf %62, %63 : vector<8x64xf32>
    %65 = math.tanh %64 : vector<8x64xf32>
    %66 = arith.index_cast %60 : i32 to index
    %c0_34 = arith.constant 0 : index
    %67 = vector.load %arg10[%66, %c0_34] : memref<64x64xf32, #tpu.memory_space<vmem>>, vector<8x64xf32>
    tpu.vector_store %arg10[%66, %c0_34], %65 {strides = array<i32>} : memref<64x64xf32, #tpu.memory_space<vmem>>, vector<8x64xf32>,
    %c6_i32 = arith.constant 6 : i32
    %c8_i32_35 = arith.constant 8 : i32
    %68 = arith.muli %c6_i32, %c8_i32_35 : i32
    %69 = tpu.assume_multiple %68, 8 : i32
    %70 = arith.index_cast %69 : i32 to index
    %c0_36 = arith.constant 0 : index
    %71 = vector.load %arg10[%70, %c0_36] : memref<64x64xf32, #tpu.memory_space<vmem>>, vector<8x64xf32>
    %cst_37 = arith.constant dense<0.000000e+00> : vector<8x64xf32>
    %72 = tpu.matmul %65, %12, %cst_37 {dimension_numbers = #tpu.dot_dimension_numbers<[1], [0], [0], [1], [0, 0, 1, 1], [], []>} : vector<8x64xf32>, vector<64x64xf32>, vector<8x64xf32> -> vector<8x64xf32>
    %73 = arith.addf %71, %72 : vector<8x64xf32>
    %74 = math.tanh %73 : vector<8x64xf32>
    %75 = arith.index_cast %69 : i32 to index
    %c0_38 = arith.constant 0 : index
    %76 = vector.load %arg10[%75, %c0_38] : memref<64x64xf32, #tpu.memory_space<vmem>>, vector<8x64xf32>
    tpu.vector_store %arg10[%75, %c0_38], %74 {strides = array<i32>} : memref<64x64xf32, #tpu.memory_space<vmem>>, vector<8x64xf32>,
    %c7_i32 = arith.constant 7 : i32
    %c8_i32_39 = arith.constant 8 : i32
    %77 = arith.muli %c7_i32, %c8_i32_39 : i32
    %78 = tpu.assume_multiple %77, 8 : i32
    %79 = arith.index_cast %78 : i32 to index
    %c0_40 = arith.constant 0 : index
    %80 = vector.load %arg10[%79, %c0_40] : memref<64x64xf32, #tpu.memory_space<vmem>>, vector<8x64xf32>
    %cst_41 = arith.constant dense<0.000000e+00> : vector<8x64xf32>
    %81 = tpu.matmul %74, %12, %cst_41 {dimension_numbers = #tpu.dot_dimension_numbers<[1], [0], [0], [1], [0, 0, 1, 1], [], []>} : vector<8x64xf32>, vector<64x64xf32>, vector<8x64xf32> -> vector<8x64xf32>
    %82 = arith.addf %80, %81 : vector<8x64xf32>
    %83 = math.tanh %82 : vector<8x64xf32>
    %84 = arith.index_cast %78 : i32 to index
    %c0_42 = arith.constant 0 : index
    %85 = vector.load %arg10[%84, %c0_42] : memref<64x64xf32, #tpu.memory_space<vmem>>, vector<8x64xf32>
    tpu.vector_store %arg10[%84, %c0_42], %83 {strides = array<i32>} : memref<64x64xf32, #tpu.memory_space<vmem>>, vector<8x64xf32>,
    %c8_i32_43 = arith.constant 8 : i32
    %c0_44 = arith.constant 0 : index
    %c0_45 = arith.constant 0 : index
    %86 = vector.load %arg9[%c0_44, %c0_45] : memref<8x64xf32, #tpu.memory_space<vmem>>, vector<8x64xf32>
    tpu.vector_store %arg9[%c0_44, %c0_45], %83 {strides = array<i32>} : memref<8x64xf32, #tpu.memory_space<vmem>>, vector<8x64xf32>,
    %c0_46 = arith.constant 0 : index
    %c0_47 = arith.constant 0 : index
    %87 = vector.load %arg10[%c0_46, %c0_47] : memref<64x64xf32, #tpu.memory_space<vmem>>, vector<64x64xf32>
    %c0_48 = arith.constant 0 : index
    %c0_49 = arith.constant 0 : index
    %88 = vector.load %arg6[%c0_48, %c0_49] : memref<1x64xf32, #tpu.memory_space<vmem>>, vector<1x64xf32>
    %89 = vector.broadcast %88 : vector<1x64xf32> to vector<64x64xf32>
    %90 = arith.mulf %87, %89 : vector<64x64xf32>
    %cst_50 = arith.constant dense<0.000000e+00> : vector<64xf32>
    %91 = vector.multi_reduction <add>, %90, %cst_50 [1] : vector<64x64xf32> to vector<64xf32>
    %92 = vector.shape_cast %91 : vector<64xf32> to vector<64x1xf32>
    %c0_51 = arith.constant 0 : index
    %c0_52 = arith.constant 0 : index
    %93 = vector.load %arg7[%c0_51, %c0_52] : memref<1x1xf32, #tpu.memory_space<vmem>>, vector<1x1xf32>
    %94 = vector.broadcast %93 : vector<1x1xf32> to vector<64x1xf32>
    %95 = arith.addf %92, %94 : vector<64x1xf32>
    %c0_53 = arith.constant 0 : index
    %c0_54 = arith.constant 0 : index
    %96 = vector.load %arg8[%c0_53, %c0_54] : memref<64x1xf32, #tpu.memory_space<vmem>>, vector<64x1xf32>
    tpu.vector_store %arg8[%c0_53, %c0_54], %95 {strides = array<i32>} : memref<64x1xf32, #tpu.memory_space<vmem>>, vector<64x1xf32>,
    return
  }
  func.func @transform_0(%arg0: i32) -> (i32, i32) {
    %c0_i32 = arith.constant 0 : i32
    %c0_i32_0 = arith.constant 0 : i32
    return %arg0, %c0_i32 : i32, i32
  }
  func.func @transform_1(%arg0: i32) -> (i32, i32) {
    %c0_i32 = arith.constant 0 : i32
    %c0_i32_0 = arith.constant 0 : i32
    %c0_i32_1 = arith.constant 0 : i32
    return %c0_i32, %c0_i32_0 : i32, i32
  }
  func.func @transform_2(%arg0: i32) -> (i32, i32) {
    %c0_i32 = arith.constant 0 : i32
    %c0_i32_0 = arith.constant 0 : i32
    %c0_i32_1 = arith.constant 0 : i32
    return %c0_i32, %c0_i32_0 : i32, i32
  }
  func.func @transform_3(%arg0: i32) -> (i32, i32) {
    %c0_i32 = arith.constant 0 : i32
    %c0_i32_0 = arith.constant 0 : i32
    %c0_i32_1 = arith.constant 0 : i32
    return %c0_i32, %c0_i32_0 : i32, i32
  }
  func.func @transform_4(%arg0: i32) -> (i32, i32) {
    %c0_i32 = arith.constant 0 : i32
    %c0_i32_0 = arith.constant 0 : i32
    %c0_i32_1 = arith.constant 0 : i32
    return %c0_i32, %c0_i32_0 : i32, i32
  }
  func.func @transform_5(%arg0: i32) -> (i32, i32) {
    %c0_i32 = arith.constant 0 : i32
    %c0_i32_0 = arith.constant 0 : i32
    %c0_i32_1 = arith.constant 0 : i32
    return %c0_i32, %c0_i32_0 : i32, i32
  }
  func.func @transform_6(%arg0: i32) -> (i32, i32) {
    %c0_i32 = arith.constant 0 : i32
    %c0_i32_0 = arith.constant 0 : i32
    %c0_i32_1 = arith.constant 0 : i32
    return %c0_i32, %c0_i32_0 : i32, i32
  }
  func.func @transform_7(%arg0: i32) -> (i32, i32) {
    %c0_i32 = arith.constant 0 : i32
    %c0_i32_0 = arith.constant 0 : i32
    return %arg0, %c0_i32 : i32, i32
  }
  func.func @transform_8(%arg0: i32) -> (i32, i32) {
    %c0_i32 = arith.constant 0 : i32
    %c0_i32_0 = arith.constant 0 : i32
    %c0_i32_1 = arith.constant 0 : i32
    return %c0_i32, %c0_i32_0 : i32, i32
  }
}

</mosaic_0001>

<bundles_post_ra>
// kernel: tpu_custom_call.1
= control target key start
LH: loop header
LB: loop body
LE: loop exit
PB: predicated region body
PF: predicated region fallthrough
CT: control target
= control target key end

     0   :  { %s1545_s0 = inlined_call_operand.vmem [shape: f32[64,1], index: 0, kind: input, shape index: {}]   ;;  %s1546_s1 = inlined_call_operand.vmem [shape: f32[8,64], index: 1, kind: input, shape index: {}]   ;;  %s1547_s2 = inlined_call_operand.hbm [shape: f32[1,64], index: 2, kind: input, shape index: {}]   ;;  %s1548_s3 = inlined_call_operand.vmem [shape: f32[64,64], index: 3, kind: input, shape index: {}]   ;;  %s1549_s4 = inlined_call_operand.vmem [shape: f32[1,64], index: 4, kind: input, shape index: {}]   ;;  %s1550_s5 = inlined_call_operand.vmem [shape: f32[1,64], index: 5, kind: input, shape index: {}]   ;;  %s1551_s6 = inlined_call_operand.<no memory space> [shape: f32[1,1], index: 6, kind: input, shape index: {}]   ;;  %s1552_s7 = inlined_call_operand.vmem [shape: f32[64,1], index: 7, kind: output, shape index: {0}]   ;;  %s1553_s8 = inlined_call_operand.hbm [shape: f32[8,64], index: 8, kind: output, shape index: {1}]  }
   0x1   :  { %v14_v0 = vstv %s1551_s6 }
   0x2   :  { %15 = vst [vmem:[#allocation3] sm:$0x1] %v14_v0 }
   0x3   :  { %16 = vsyncpa [#allocation5], 0 }
   0x4   :  { %17 = vsyncpa [#allocation6], 0  ;;  %s1163_s29 = smov [#allocation4]  }
   0x5   :  { %s28_s30 = sshll.u32 %s1163_s29, 4  ;;  %s29_s30 = int_to_ptr.vmem [resolvable:$true] %s28_s30 }
   0x6   :  { %s1127_s9 = scalar_lea.vmem %s29_s30, 16  ;;  %s1131_s10 = scalar_lea.vmem %s29_s30, 32 }
   0x7   :  { %p1128_p0 = scmp.ne.s32.totalorder %s29_s30, %s1127_s9  ;;  %p1132_p1 = scmp.lt.s32.totalorder %s29_s30, %s29_s30 }
   0x8   :  { %p1133_p2 = scmp.lt.s32.totalorder %s1131_s10, %s1127_s9 }
   0xa   :  { %p1134_p3 = por %p1133_p2, %p1132_p1 }
   0xc   :  { %p1135_p4 = pnand %p1134_p3, %p1128_p0 }
   0xe   :  { %1138 = shalt.err (!%p1135_p4)
}
   0xf   :  { %31 = dma.hbm_to_vmem [thread:$0]  %s1547_s2, 16, %s29_s30, [#allocation5]  }
  0x10   :  { %1159 = dma.done.wait [#allocation5], 16  }
  0x11   :  { %1160 = vsyncadd [#allocation5], 4294967280  ;;  %v1164_v1 = vmov 0.0   ;;  %vm1165_vm0 = vmmov 0   ;;  %v1166_v2 = vmov 0   ;;  %v1228_v3 = vld [vmem:[%s1548_s3 + $0x38] sm:$0xff] }
  0x12   :  { %944 = vmatprep.subr.mxu0 %v1164_v1  ;;  %960 = vmatprep.mubr.msk.f32.mxu0 %vm1165_vm0, %v1164_v1  ;;  %v1233_v4 = vld [vmem:[%s1548_s3 + $0x30] sm:$0xff]  ;;  %vm48_vm1 = vcmask 523264   ;;  %v1241_v5 = vld [vmem:[%s1548_s3 + $0x28] sm:$0xff]  ;;  %v47_v6 = vld [vmem:[%s1546_s1] sm:$0xff]  ;;  %vm832_vm2 = vcmask 7168   ;;  %s1167_s11 = smov [#allocation7]  }
  0x13   :  { %1101 = vset.pattern.permute.xlu0 %v1166_v2  ;;  %963 = vmatprep.subr.mxu1 %v1164_v1  ;;  %49 = vst.msk [vmem:[#allocation7] sm:$0xff] %vm48_vm1, %v47_v6  ;;  %v50_v7 = vld [vmem:[%s1545_s0] sm:$0xff]  ;;  %v51_v9 = vld [vmem:[%s1545_s0 + $0x8] sm:$0xff]  ;;  %v1268_v10 = vld [vmem:[%s1548_s3 + $0x18] sm:$0xff]  ;;  %s849_s12 = sshll.u32 %s1167_s11, 4  ;;  %s850_s12 = int_to_ptr.vmem [resolvable:$true] %s849_s12 }
  0x14   :  { %979 = vmatprep.mubr.msk.f32.mxu1 %vm1165_vm0, %v1164_v1  ;;  %1102 = vset.pattern.permute.xlu1 %v1166_v2  ;;  %v1257_v8 = vld [vmem:[%s1548_s3 + $0x20] sm:$0xff]  ;;  %v1277_v11 = vld [vmem:[%s1548_s3 + $0x10] sm:$0xff]  ;;  %v1288_v13 = vld [vmem:[%s1548_s3 + $0x8] sm:$0xff]  ;;  %s1139_s6 = scalar_lea.vmem %s850_s12, 128  ;;  %p1144_p6 = scmp.lt.s32.totalorder %s850_s12, %s850_s12 }
  0x15   :  { %945 = vmatpush3.msra.mxu0 %v1228_v3  ;;  %964 = vmatpush3.msra.mxu1 %v1228_v3  ;;  %v54_v12 = vld [vmem:[%s1545_s0 + $0x20] sm:$0xff]  ;;  %v56_v16 = vld [vmem:[%s1545_s0 + $0x30] sm:$0xff]  ;;  %v53_v41 = vld [vmem:[%s1545_s0 + $0x18] sm:$0xff]  ;;  %p1140_p5 = scmp.ne.s32.totalorder %s850_s12, %s1139_s6  ;;  %p1145_p7 = scmp.lt.s32.totalorder %s1139_s6, %s1139_s6 }
  0x16   :  { %946 = vmatprep.subr.mxu0 %v1164_v1  ;;  %965 = vmatprep.subr.mxu1 %v1164_v1  ;;  %v1297_v14 = vld [vmem:[%s1548_s3] sm:$0xff]  ;;  %v52_v40 = vld [vmem:[%s1545_s0 + $0x10] sm:$0xff]  ;;  %v55_v42 = vld [vmem:[%s1545_s0 + $0x28] sm:$0xff] }
  0x17   :  { %947 = vmatpush3.msra.mxu0 %v1233_v4  ;;  %966 = vmatpush3.msra.mxu1 %v1233_v4  ;;  %v1332_v17 = vld [vmem:[#allocation4] ss:$0 sm:$0xff]  ;;  %v1337_v18 = vld [vmem:[%s1549_s4] ss:$0 sm:$0xff]  ;;  %v57_v43 = vld [vmem:[%s1545_s0 + $0x38] sm:$0xff]  ;;  %p1146_p8 = por %p1145_p7, %p1144_p6 }
  0x18   :  { %948 = vmatprep.subr.mxu0 %v1164_v1  ;;  %61 = vperm.xlu0 %1101, %v50_v7   ;;  %v1362_v36 = vld [vmem:[%s1550_s5] ss:$0 sm:$0xff] }
  0x19   :  { %949 = vmatpush3.msra.mxu0 %v1241_v5  ;;  %967 = vmatprep.subr.mxu1 %v1164_v1  ;;  %v1390_v44 = vld [vmem:[#allocation3] ss:$0 sm:$0xff]  ;;  %p1147_p9 = pnand %p1146_p8, %p1140_p5 }
  0x1a   :  { %950 = vmatprep.subr.mxu0 %v1164_v1  ;;  %968 = vmatpush3.msra.mxu1 %v1241_v5  ;;  %v145_v15 = vld [vmem:[#allocation7] sm:$0xff] }
  0x1b   :  { %951 = vmatpush3.msra.mxu0 %v1257_v8  ;;  %969 = vmatprep.subr.mxu1 %v1164_v1 }
  0x1c   :  { %952 = vmatprep.subr.mxu0 %v1164_v1  ;;  %66 = vperm.xlu0 %1101, %v51_v9  }
  0x1d   :  { %953 = vmatpush3.msra.mxu0 %v1268_v10  ;;  %970 = vmatpush3.msra.mxu1 %v1257_v8 }
  0x1e   :  { %954 = vmatprep.subr.mxu0 %v1164_v1  ;;  %971 = vmatprep.subr.mxu1 %v1164_v1 }
  0x1f   :  { %955 = vmatpush3.msra.mxu0 %v1277_v11  ;;  %972 = vmatpush3.msra.mxu1 %v1268_v10 }
  0x20   :  { %956 = vmatprep.subr.mxu0 %v1164_v1  ;;  %81 = vperm.xlu0 %1101, %v54_v12  }
  0x21   :  { %957 = vmatpush3.msra.mxu0 %v1288_v13  ;;  %973 = vmatprep.subr.mxu1 %v1164_v1 }
  0x22   :  { %958 = vmatprep.subr.mxu0 %v1164_v1  ;;  %974 = vmatpush3.msra.mxu1 %v1277_v11 }
  0x23   :  { %959 = vmatpush3.msra.mxu0 %v1297_v14  ;;  %975 = vmatprep.subr.mxu1 %v1164_v1 }
  0x24   :  { %961 = vmatmul.mubr.msk.f32.vlgmr.msra.gmra.mxu0 %vm48_vm1, %v145_v15  ;;  %91 = vperm.xlu0 %1101, %v56_v16  }
  0x25   :  { %976 = vmatpush3.msra.mxu1 %v1288_v13  ;;  %982 = vmatprep.subr.mxu0 %v1164_v1 }
  0x26   :  { %977 = vmatprep.subr.mxu1 %v1164_v1  ;;  %983 = vmatpush3.msra.mxu0 %v1228_v3 }
  0x27   :  { %978 = vmatpush3.msra.mxu1 %v1297_v14  ;;  %984 = vmatprep.subr.mxu0 %v1164_v1 }
  0x28   :  { %985 = vmatpush3.msra.mxu0 %v1233_v4  ;;  %998 = vmatprep.mubr.msk.f32.mxu0 %vm1165_vm0, %v1164_v1 }
  0x29   :  { %986 = vmatprep.subr.mxu0 %v1164_v1  ;;  %1001 = vmatprep.subr.mxu1 %v1164_v1 }
  0x2a   :  { %987 = vmatpush3.msra.mxu0 %v1241_v5  ;;  %71 = vperm.xlu1 %1102, %v52_v40  }
  0x2b   :  { %988 = vmatprep.subr.mxu0 %v1164_v1 }
  0x2c   :  { %989 = vmatpush3.msra.mxu0 %v1257_v8 }
  0x2d   :  { %990 = vmatprep.subr.mxu0 %v1164_v1 }
  0x2e   :  { %991 = vmatpush3.msra.mxu0 %v1268_v10  ;;  %76 = vperm.xlu1 %1102, %v53_v41  }
  0x2f   :  { %992 = vmatprep.subr.mxu0 %v1164_v1 }
  0x30   :  { %993 = vmatpush3.msra.mxu0 %v1277_v11 }
  0x31   :  { %994 = vmatprep.subr.mxu0 %v1164_v1 }
  0x32   :  { %995 = vmatpush3.msra.mxu0 %v1288_v13  ;;  %86 = vperm.xlu1 %1102, %v55_v42  }
  0x33   :  { %996 = vmatprep.subr.mxu0 %v1164_v1 }
  0x34   :  { %997 = vmatpush3.msra.mxu0 %v1297_v14 }
  0x35   :  { %1020 = vmatprep.subr.mxu0 %v1164_v1 }
  0x36   :  { %96 = vperm.xlu1 %1102, %v57_v43  }
  0x93   :  { %v62_v19 = vpop.permute.xlu0 %61 }
  0x94   :  { %v105_v20 = vmul.f32 %v1332_v17, %v62_v19 }
  0x96   :  { %v120_v21 = vadd.f32 %v1337_v18, %v105_v20 }
  0x97   :  { %v67_v22 = vpop.permute.xlu0 %66 }
  0x98   :  { %129 = vst.msk [vmem:[#allocation2] sm:$0xff] %vm48_vm1, %v120_v21  ;;  %v106_v23 = vmul.f32 %v1332_v17, %v67_v22 }
  0x9a   :  { %v121_v24 = vadd.f32 %v1337_v18, %v106_v23 }
  0x9b   :  { %v82_v25 = vpop.permute.xlu0 %81 }
  0x9c   :  { %130 = vst.msk [vmem:[#allocation2 + $0x8] sm:$0xff] %vm48_vm1, %v121_v24  ;;  %v109_v26 = vmul.f32 %v1332_v17, %v82_v25 }
  0x9e   :  { %v124_v27 = vadd.f32 %v1337_v18, %v109_v26 }
  0x9f   :  { %v92_v28 = vpop.permute.xlu0 %91  ;;  %v146_v31 = vld [vmem:[#allocation2] sm:$0xff] }
  0xa0   :  { %133 = vst.msk [vmem:[#allocation2 + $0x20] sm:$0xff] %vm48_vm1, %v124_v27  ;;  %v111_v29 = vmul.f32 %v1332_v17, %v92_v28 }
  0xa2   :  { %v126_v30 = vadd.f32 %v1337_v18, %v111_v29 }
  0xa3   :  { %v224_v59 = vld [vmem:[#allocation2 + $0x8] sm:$0xff] }
  0xa4   :  { %135 = vst.msk [vmem:[#allocation2 + $0x30] sm:$0xff] %vm48_vm1, %v126_v30 }
  0xa5   :  { %v72_v45 = vpop.permute.xlu1 %71 }
  0xa6   :  { %v107_v47 = vmul.f32 %v1332_v17, %v72_v45 }
  0xa8   :  { %v122_v49 = vadd.f32 %v1337_v18, %v107_v47 }
  0xa9   :  { %v77_v50 = vpop.permute.xlu1 %76 }
  0xaa   :  { %131 = vst.msk [vmem:[#allocation2 + $0x10] sm:$0xff] %vm48_vm1, %v122_v49  ;;  %v108_v51 = vmul.f32 %v1332_v17, %v77_v50 }
  0xab   :  { %v614_v47 = vld [vmem:[#allocation2 + $0x30] sm:$0xff] }
  0xac   :  { %v123_v52 = vadd.f32 %v1337_v18, %v108_v51 }
  0xad   :  { %v87_v53 = vpop.permute.xlu1 %86 }
  0xae   :  { %132 = vst.msk [vmem:[#allocation2 + $0x18] sm:$0xff] %vm48_vm1, %v123_v52  ;;  %v110_v54 = vmul.f32 %v1332_v17, %v87_v53 }
  0xb0   :  { %v125_v55 = vadd.f32 %v1337_v18, %v110_v54 }
  0xb1   :  { %v97_v56 = vpop.permute.xlu1 %96  ;;  %v302_v12 = vld [vmem:[#allocation2 + $0x10] sm:$0xff] }
  0xb2   :  { %134 = vst.msk [vmem:[#allocation2 + $0x28] sm:$0xff] %vm48_vm1, %v125_v55  ;;  %v112_v57 = vmul.f32 %v1332_v17, %v97_v56 }
  0xb4   :  { %v127_v58 = vadd.f32 %v1337_v18, %v112_v57 }
  0xb5   :  { %v380_v24 = vld [vmem:[#allocation2 + $0x18] sm:$0xff] }
  0xb6   :  { %136 = vst.msk [vmem:[#allocation2 + $0x38] sm:$0xff] %vm48_vm1, %v127_v58 }
  0xbd   :  { %v692_v57 = vld [vmem:[#allocation2 + $0x38] sm:$0xff] }
  0xe4   :  { %v216_v32 = vpop.f32.mrf.mxu0 }
  0xe5   :  { %v220_v33 = vadd.f32 %v216_v32, %v146_v31 }
  0xe6   :  { %v962_v34 = vpop.f32.mrf.mxu0 }
  0xe7   :  { %1103 = vtanh.f32 %v220_v33  ;;  %v458_v34 = vld [vmem:[#allocation2 + $0x20] sm:$0xff] }
  0xf4   :  { %v1104_v35 = vpop.eup %1103 }
  0xf5   :  { %222 = vst.msk [vmem:[#allocation2] sm:$0xff] %vm48_vm1, %v1104_v35  ;;  %980 = vmatmul.mubr.msk.f32.vlgmr.msra.gmra.mxu1 %vm48_vm1, %v1104_v35 }
  0xf6   :  { %1002 = vmatpush3.msra.mxu1 %v1228_v3  ;;  %1017 = vmatprep.mubr.msk.f32.mxu1 %vm1165_vm0, %v1164_v1 }
  0xf7   :  { %1003 = vmatprep.subr.mxu1 %v1164_v1 }
  0xf8   :  { %1004 = vmatpush3.msra.mxu1 %v1233_v4 }
  0xf9   :  { %1005 = vmatprep.subr.mxu1 %v1164_v1 }
  0xfa   :  { %1006 = vmatpush3.msra.mxu1 %v1241_v5 }
  0xfb   :  { %1007 = vmatprep.subr.mxu1 %v1164_v1 }
  0xfc   :  { %v770_v37 = vld [vmem:[#allocation2] sm:$0xff]  ;;  %1008 = vmatpush3.msra.mxu1 %v1257_v8 }
  0xfd   :  { %v785_v38 = vmul.f32 %v1362_v36, %v770_v37  ;;  %1009 = vmatprep.subr.mxu1 %v1164_v1 }
  0xfe   :  { %1010 = vmatpush3.msra.mxu1 %v1268_v10 }
  0xff   :  { %v793_v39 = vsel %vm48_vm1, %v785_v38, 0.0  ;;  %1011 = vmatprep.subr.mxu1 %v1164_v1 }
 0x100   :  { %794 = vadd.xlane.f32.xlu0 %v793_v39  ;;  %1012 = vmatpush3.msra.mxu1 %v1277_v11 }
 0x101   :  { %1013 = vmatprep.subr.mxu1 %v1164_v1 }
 0x102   :  { %1014 = vmatpush3.msra.mxu1 %v1288_v13 }
 0x103   :  { %1015 = vmatprep.subr.mxu1 %v1164_v1 }
 0x104   :  { %1016 = vmatpush3.msra.mxu1 %v1297_v14 }
 0x105   :  { %1039 = vmatprep.subr.mxu1 %v1164_v1 }
 0x189   :  { %v795_v46 = vpop.xlane.xlu0 %794 }
 0x18a   :  { %v824_v48 = vadd.f32 %v1390_v44, %v795_v46 }
 0x18c   :  { %833 = vst.msk [vmem:[%s1552_s7] sm:$0xff] %vm832_vm2, %v824_v48 }
 0x1b5   :  { %v294_v60 = vpop.f32.mrf.mxu1 }
 0x1b6   :  { %v298_v61 = vadd.f32 %v294_v60, %v224_v59 }
 0x1b7   :  { %v981_v62 = vpop.f32.mrf.mxu1 }
 0x1b8   :  { %1105 = vtanh.f32 %v298_v61 }
 0x1c5   :  { %v1106_v63 = vpop.eup %1105 }
 0x1c6   :  { %300 = vst.msk [vmem:[#allocation2 + $0x8] sm:$0xff] %vm48_vm1, %v1106_v63  ;;  %999 = vmatmul.mubr.msk.f32.vlgmr.msra.gmra.mxu0 %vm48_vm1, %v1106_v63 }
 0x1c7   :  { %1021 = vmatpush3.msra.mxu0 %v1228_v3  ;;  %1036 = vmatprep.mubr.msk.f32.mxu0 %vm1165_vm0, %v1164_v1 }
 0x1c8   :  { %1022 = vmatprep.subr.mxu0 %v1164_v1 }
 0x1c9   :  { %1023 = vmatpush3.msra.mxu0 %v1233_v4 }
 0x1ca   :  { %1024 = vmatprep.subr.mxu0 %v1164_v1 }
 0x1cb   :  { %1025 = vmatpush3.msra.mxu0 %v1241_v5 }
 0x1cc   :  { %1026 = vmatprep.subr.mxu0 %v1164_v1 }
 0x1cd   :  { %v771_v0 = vld [vmem:[#allocation2 + $0x8] sm:$0xff]  ;;  %1027 = vmatpush3.msra.mxu0 %v1257_v8 }
 0x1ce   :  { %v786_v2 = vmul.f32 %v1362_v36, %v771_v0  ;;  %1028 = vmatprep.subr.mxu0 %v1164_v1 }
 0x1cf   :  { %1029 = vmatpush3.msra.mxu0 %v1268_v10 }
 0x1d0   :  { %v796_v6 = vsel %vm48_vm1, %v786_v2, 0.0  ;;  %1030 = vmatprep.subr.mxu0 %v1164_v1 }
 0x1d1   :  { %797 = vadd.xlane.f32.xlu1 %v796_v6  ;;  %1031 = vmatpush3.msra.mxu0 %v1277_v11 }
 0x1d2   :  { %1032 = vmatprep.subr.mxu0 %v1164_v1 }
 0x1d3   :  { %1033 = vmatpush3.msra.mxu0 %v1288_v13 }
 0x1d4   :  { %1034 = vmatprep.subr.mxu0 %v1164_v1 }
 0x1d5   :  { %1035 = vmatpush3.msra.mxu0 %v1297_v14 }
 0x1d6   :  { %1058 = vmatprep.subr.mxu0 %v1164_v1 }
 0x25a   :  { %v798_v7 = vpop.xlane.xlu1 %797 }
 0x25b   :  { %v825_v9 = vadd.f32 %v1390_v44, %v798_v7 }
 0x25d   :  { %834 = vst.msk [vmem:[%s1552_s7 + $0x8] sm:$0xff] %vm832_vm2, %v825_v9 }
 0x286   :  { %v372_v15 = vpop.f32.mrf.mxu0 }
 0x287   :  { %v376_v16 = vadd.f32 %v372_v15, %v302_v12 }
 0x288   :  { %v1000_v17 = vpop.f32.mrf.mxu0 }
 0x289   :  { %1107 = vtanh.f32 %v376_v16 }
 0x296   :  { %v1108_v18 = vpop.eup %1107 }
 0x297   :  { %378 = vst.msk [vmem:[#allocation2 + $0x10] sm:$0xff] %vm48_vm1, %v1108_v18  ;;  %1018 = vmatmul.mubr.msk.f32.vlgmr.msra.gmra.mxu1 %vm48_vm1, %v1108_v18 }
 0x298   :  { %1040 = vmatpush3.msra.mxu1 %v1228_v3  ;;  %1055 = vmatprep.mubr.msk.f32.mxu1 %vm1165_vm0, %v1164_v1 }
 0x299   :  { %1041 = vmatprep.subr.mxu1 %v1164_v1 }
 0x29a   :  { %1042 = vmatpush3.msra.mxu1 %v1233_v4 }
 0x29b   :  { %1043 = vmatprep.subr.mxu1 %v1164_v1 }
 0x29c   :  { %1044 = vmatpush3.msra.mxu1 %v1241_v5 }
 0x29d   :  { %1045 = vmatprep.subr.mxu1 %v1164_v1 }
 0x29e   :  { %v772_v19 = vld [vmem:[#allocation2 + $0x10] sm:$0xff]  ;;  %1046 = vmatpush3.msra.mxu1 %v1257_v8 }
 0x29f   :  { %v787_v20 = vmul.f32 %v1362_v36, %v772_v19  ;;  %1047 = vmatprep.subr.mxu1 %v1164_v1 }
 0x2a0   :  { %1048 = vmatpush3.msra.mxu1 %v1268_v10 }
 0x2a1   :  { %v799_v21 = vsel %vm48_vm1, %v787_v20, 0.0  ;;  %1049 = vmatprep.subr.mxu1 %v1164_v1 }
 0x2a2   :  { %800 = vadd.xlane.f32.xlu0 %v799_v21  ;;  %1050 = vmatpush3.msra.mxu1 %v1277_v11 }
 0x2a3   :  { %1051 = vmatprep.subr.mxu1 %v1164_v1 }
 0x2a4   :  { %1052 = vmatpush3.msra.mxu1 %v1288_v13 }
 0x2a5   :  { %1053 = vmatprep.subr.mxu1 %v1164_v1 }
 0x2a6   :  { %1054 = vmatpush3.msra.mxu1 %v1297_v14 }
 0x2a7   :  { %1077 = vmatprep.subr.mxu1 %v1164_v1 }
 0x32b   :  { %v801_v22 = vpop.xlane.xlu0 %800 }
 0x32c   :  { %v826_v23 = vadd.f32 %v1390_v44, %v801_v22 }
 0x32e   :  { %835 = vst.msk [vmem:[%s1552_s7 + $0x10] sm:$0xff] %vm832_vm2, %v826_v23 }
 0x357   :  { %v450_v25 = vpop.f32.mrf.mxu1 }
 0x358   :  { %v454_v26 = vadd.f32 %v450_v25, %v380_v24 }
 0x359   :  { %v1019_v27 = vpop.f32.mrf.mxu1 }
 0x35a   :  { %1109 = vtanh.f32 %v454_v26 }
 0x367   :  { %v1110_v28 = vpop.eup %1109 }
 0x368   :  { %456 = vst.msk [vmem:[#allocation2 + $0x18] sm:$0xff] %vm48_vm1, %v1110_v28  ;;  %1037 = vmatmul.mubr.msk.f32.vlgmr.msra.gmra.mxu0 %vm48_vm1, %v1110_v28 }
 0x369   :  { %1059 = vmatpush3.msra.mxu0 %v1228_v3  ;;  %1074 = vmatprep.mubr.msk.f32.mxu0 %vm1165_vm0, %v1164_v1 }
 0x36a   :  { %1060 = vmatprep.subr.mxu0 %v1164_v1 }
 0x36b   :  { %1061 = vmatpush3.msra.mxu0 %v1233_v4 }
 0x36c   :  { %1062 = vmatprep.subr.mxu0 %v1164_v1 }
 0x36d   :  { %1063 = vmatpush3.msra.mxu0 %v1241_v5 }
 0x36e   :  { %1064 = vmatprep.subr.mxu0 %v1164_v1 }
 0x36f   :  { %v773_v29 = vld [vmem:[#allocation2 + $0x18] sm:$0xff]  ;;  %1065 = vmatpush3.msra.mxu0 %v1257_v8 }
 0x370   :  { %v788_v30 = vmul.f32 %v1362_v36, %v773_v29  ;;  %1066 = vmatprep.subr.mxu0 %v1164_v1 }
 0x371   :  { %1067 = vmatpush3.msra.mxu0 %v1268_v10 }
 0x372   :  { %v802_v31 = vsel %vm48_vm1, %v788_v30, 0.0  ;;  %1068 = vmatprep.subr.mxu0 %v1164_v1 }
 0x373   :  { %803 = vadd.xlane.f32.xlu0 %v802_v31  ;;  %1069 = vmatpush3.msra.mxu0 %v1277_v11 }
 0x374   :  { %1070 = vmatprep.subr.mxu0 %v1164_v1 }
 0x375   :  { %1071 = vmatpush3.msra.mxu0 %v1288_v13 }
 0x376   :  { %1072 = vmatprep.subr.mxu0 %v1164_v1 }
 0x377   :  { %1073 = vmatpush3.msra.mxu0 %v1297_v14 }
 0x3fc   :  { %v804_v32 = vpop.xlane.xlu0 %803 }
 0x3fd   :  { %v827_v33 = vadd.f32 %v1390_v44, %v804_v32 }
 0x3ff   :  { %836 = vst.msk [vmem:[%s1552_s7 + $0x18] sm:$0xff] %vm832_vm2, %v827_v33 }
 0x428   :  { %v528_v35 = vpop.f32.mrf.mxu0 }
 0x429   :  { %v532_v37 = vadd.f32 %v528_v35, %v458_v34 }
 0x42a   :  { %v1038_v38 = vpop.f32.mrf.mxu0 }
 0x42b   :  { %1111 = vtanh.f32 %v532_v37 }
 0x438   :  { %v1112_v39 = vpop.eup %1111 }
 0x439   :  { %534 = vst.msk [vmem:[#allocation2 + $0x20] sm:$0xff] %vm48_vm1, %v1112_v39  ;;  %1056 = vmatmul.mubr.msk.f32.vlgmr.msra.gmra.mxu1 %vm48_vm1, %v1112_v39 }
 0x43a   :  { %1078 = vmatpush3.msra.mxu1 %v1228_v3  ;;  %1093 = vmatprep.mubr.msk.f32.mxu1 %vm1165_vm0, %v1164_v1 }
 0x43b   :  { %1079 = vmatprep.subr.mxu1 %v1164_v1 }
 0x43c   :  { %1080 = vmatpush3.msra.mxu1 %v1233_v4 }
 0x43d   :  { %1081 = vmatprep.subr.mxu1 %v1164_v1 }
 0x43e   :  { %1082 = vmatpush3.msra.mxu1 %v1241_v5 }
 0x43f   :  { %1083 = vmatprep.subr.mxu1 %v1164_v1 }
 0x440   :  { %v774_v40 = vld [vmem:[#allocation2 + $0x20] sm:$0xff]  ;;  %1084 = vmatpush3.msra.mxu1 %v1257_v8  ;;  %v536_v8 = vld [vmem:[#allocation2 + $0x28] sm:$0xff] }
 0x441   :  { %v789_v41 = vmul.f32 %v1362_v36, %v774_v40  ;;  %1085 = vmatprep.subr.mxu1 %v1164_v1 }
 0x442   :  { %1086 = vmatpush3.msra.mxu1 %v1268_v10 }
 0x443   :  { %v805_v3 = vsel %vm48_vm1, %v789_v41, 0.0  ;;  %1087 = vmatprep.subr.mxu1 %v1164_v1 }
 0x444   :  { %806 = vadd.xlane.f32.xlu1 %v805_v3  ;;  %1088 = vmatpush3.msra.mxu1 %v1277_v11 }
 0x445   :  { %1089 = vmatprep.subr.mxu1 %v1164_v1 }
 0x446   :  { %1090 = vmatpush3.msra.mxu1 %v1288_v13 }
 0x447   :  { %1091 = vmatprep.subr.mxu1 %v1164_v1 }
 0x448   :  { %1092 = vmatpush3.msra.mxu1 %v1297_v14 }
 0x4cd   :  { %v807_v4 = vpop.xlane.xlu1 %806 }
 0x4ce   :  { %v828_v5 = vadd.f32 %v1390_v44, %v807_v4 }
 0x4d0   :  { %837 = vst.msk [vmem:[%s1552_s7 + $0x20] sm:$0xff] %vm832_vm2, %v828_v5 }
 0x4f9   :  { %v606_v10 = vpop.f32.mrf.mxu1 }
 0x4fa   :  { %v610_v42 = vadd.f32 %v606_v10, %v536_v8 }
 0x4fb   :  { %v1057_v11 = vpop.f32.mrf.mxu1 }
 0x4fc   :  { %1113 = vtanh.f32 %v610_v42 }
 0x509   :  { %v1114_v43 = vpop.eup %1113 }
 0x50a   :  { %612 = vst.msk [vmem:[#allocation2 + $0x28] sm:$0xff] %vm48_vm1, %v1114_v43  ;;  %1075 = vmatmul.mubr.msk.f32.vlgmr.msra.gmra.mxu0 %vm48_vm1, %v1114_v43 }
 0x511   :  { %v775_v1 = vld [vmem:[#allocation2 + $0x28] sm:$0xff] }
 0x512   :  { %v790_v13 = vmul.f32 %v1362_v36, %v775_v1 }
 0x514   :  { %v808_v14 = vsel %vm48_vm1, %v790_v13, 0.0 }
 0x515   :  { %809 = vadd.xlane.f32.xlu0 %v808_v14 }
 0x59e   :  { %v810_v45 = vpop.xlane.xlu0 %809 }
 0x59f   :  { %v829_v46 = vadd.f32 %v1390_v44, %v810_v45 }
 0x5a1   :  { %838 = vst.msk [vmem:[%s1552_s7 + $0x28] sm:$0xff] %vm832_vm2, %v829_v46 }
 0x5ca   :  { %v684_v48 = vpop.f32.mrf.mxu0 }
 0x5cb   :  { %v688_v49 = vadd.f32 %v684_v48, %v614_v47 }
 0x5cc   :  { %v1076_v50 = vpop.f32.mrf.mxu0 }
 0x5cd   :  { %1115 = vtanh.f32 %v688_v49 }
 0x5da   :  { %v1116_v51 = vpop.eup %1115 }
 0x5db   :  { %690 = vst.msk [vmem:[#allocation2 + $0x30] sm:$0xff] %vm48_vm1, %v1116_v51  ;;  %1094 = vmatmul.mubr.msk.f32.vlgmr.msra.gmra.mxu1 %vm48_vm1, %v1116_v51 }
 0x5e2   :  { %v776_v52 = vld [vmem:[#allocation2 + $0x30] sm:$0xff] }
 0x5e3   :  { %v791_v53 = vmul.f32 %v1362_v36, %v776_v52 }
 0x5e5   :  { %v811_v54 = vsel %vm48_vm1, %v791_v53, 0.0 }
 0x5e6   :  { %812 = vadd.xlane.f32.xlu1 %v811_v54 }
 0x66f   :  { %v813_v55 = vpop.xlane.xlu1 %812 }
 0x670   :  { %v830_v56 = vadd.f32 %v1390_v44, %v813_v55 }
 0x672   :  { %839 = vst.msk [vmem:[%s1552_s7 + $0x30] sm:$0xff] %vm832_vm2, %v830_v56 }
 0x69b   :  { %v762_v58 = vpop.f32.mrf.mxu1 }
 0x69c   :  { %v766_v59 = vadd.f32 %v762_v58, %v692_v57 }
 0x69d   :  { %v1095_v60 = vpop.f32.mrf.mxu1 }
 0x69e   :  { %1117 = vtanh.f32 %v766_v59 }
 0x6ab   :  { %v1118_v61 = vpop.eup %1117 }
 0x6ac   :  { %768 = vst.msk [vmem:[#allocation2 + $0x38] sm:$0xff] %vm48_vm1, %v1118_v61  ;;  %769 = vst.msk [vmem:[#allocation7] sm:$0xff] %vm48_vm1, %v1118_v61 }
 0x6b3   :  { %v777_v62 = vld [vmem:[#allocation2 + $0x38] sm:$0xff] }
 0x6b4   :  { %v792_v63 = vmul.f32 %v1362_v36, %v777_v62 }
 0x6b6   :  { %v814_v0 = vsel %vm48_vm1, %v792_v63, 0.0 }
 0x6b7   :  { %815 = vadd.xlane.f32.xlu0 %v814_v0 }
 0x6b8   :  { %1150 = shalt.err (!%p1147_p9)
}
 0x6b9   :  { %852 = dma.vmem_to_hbm [thread:$0]  %s850_s12, 128, %s1553_s8, [#allocation6]  }
 0x740   :  { %v816_v2 = vpop.xlane.xlu0 %815 }
 0x741   :  { %v831_v36 = vadd.f32 %v1390_v44, %v816_v2 }
 0x743   :  { %840 = vst.msk [vmem:[%s1552_s7 + $0x38] sm:$0xff] %vm832_vm2, %v831_v36 }
 0x744   :  { %1161 = dma.done.wait [#allocation6], 128  }
 0x745   :  { %1162 = vsyncadd [#allocation6], 4294967168 }
 0x746   :  { %858 = vsyncpa [#allocation5], 1 }
 0x747   :  { %859 = vsyncpa [#allocation6], 1 }

</bundles_post_ra>
